<compile_context>
chip_gen: v7x
topology: tpu7x:2x2x1
jax: 0.10.0
libtpu: 0.0.40
codegen_flags: <defaults>
</compile_context>

<pallas_src>
import jax
import jax.numpy as jnp
from jax import lax
from jax.experimental import pallas as pl
from jax.experimental.pallas import tpu as pltpu


# Combined table bytes under which both tables are kept VMEM-resident.
# Conservative across generations (v7x has 64 MiB physical VMEM and Pallas may
# double-buffer each resident input block).
_VMEM_TABLE_BUDGET_BYTES = 16 * 1024 * 1024
_ISSUE_UNROLL = 8  # row-gather DMA descriptor issue unroll factor


def _reduce_rows_lane_dense(prod):
    """(tb, D) -> (1, tb): per-row sum over D, landing lane-dense via a ones-matmul."""
    d = prod.shape[-1]
    ones_row = jnp.ones((1, d), prod.dtype)
    return lax.dot_general(ones_row, prod,
                           dimension_numbers=(((1,), (1,)), ((), ())),
                           preferred_element_type=jnp.float32)


# --------------------------------------------------------------------------
# Fast path: both tables VMEM-resident, one-hot MXU gather.
# --------------------------------------------------------------------------
def _mf_small_kernel(uidx_ref, iidx_ref, user_ref, item_ref, out_ref):
    # uidx/iidx: (tb, 1) int32 in VMEM; user/item: full (U, D)/(Ni, D) tables.
    tb = uidx_ref.shape[0]
    n_users, _ = user_ref.shape
    n_items = item_ref.shape[0]

    u_oh = (uidx_ref[...] ==
            lax.broadcasted_iota(jnp.int32, (tb, n_users), 1)).astype(user_ref.dtype)
    i_oh = (iidx_ref[...] ==
            lax.broadcasted_iota(jnp.int32, (tb, n_items), 1)).astype(item_ref.dtype)
    u_rows = jnp.dot(u_oh, user_ref[...], preferred_element_type=jnp.float32)
    i_rows = jnp.dot(i_oh, item_ref[...], preferred_element_type=jnp.float32)

    out_ref[...] = _reduce_rows_lane_dense(u_rows * i_rows)


# --------------------------------------------------------------------------
# Large-table path: HBM row gather, double-buffered across grid steps.
# --------------------------------------------------------------------------
def _mf_gather_kernel(uidx_ref, iidx_ref,        # SMEM scalar-prefetch: (B,) int32 each
                      user_hbm, item_hbm,        # HBM (pl.ANY): (U, D), (Ni, D)
                      out_ref,                   # VMEM out block: (1, tb) f32
                      u_buf, i_buf, sem):        # (2, tb, D), (2, tb, D), DMA sems (2, 2)
    nsteps = pl.num_programs(0)
    step = pl.program_id(0)
    _, tb, _ = u_buf.shape
    unroll = _ISSUE_UNROLL if tb % _ISSUE_UNROLL == 0 else 1

    # Invariant (required for the aggregate waits below): every copy signalling
    # sem[slot, 0] is a (1, D) row of user_table.dtype and every copy
    # signalling sem[slot, 1] is a (1, D) row of item_table.dtype, so a single
    # (tb, D)-sized wait per semaphore drains exactly one tile's tb row copies.
    def issue_tile(tile, slot):
        base = tile * tb

        @pl.loop(0, tb // unroll)
        def _issue(g):
            r0 = pl.multiple_of(g * unroll, unroll)
            for j in range(unroll):           # x8 unrolled descriptor issue
                r = r0 + j
                u_row = uidx_ref[base + r]
                i_row = iidx_ref[base + r]
                pltpu.make_async_copy(
                    user_hbm.at[pl.ds(u_row, 1), :],
                    u_buf.at[slot, pl.ds(r, 1), :],
                    sem.at[slot, 0]).start()
                pltpu.make_async_copy(
                    item_hbm.at[pl.ds(i_row, 1), :],
                    i_buf.at[slot, pl.ds(r, 1), :],
                    sem.at[slot, 1]).start()

    slot = step % 2

    # Prime the pipeline: tile 0's gathers are issued on the first step only.
    @pl.when(step == 0)
    def _prime():
        issue_tile(0, 0)

    # Aggregate waits: one per table semaphore (replaces 2*tb per-row waits;
    # same-src/dst descriptor is only used to size the wait).
    pltpu.make_async_copy(u_buf.at[slot], u_buf.at[slot], sem.at[slot, 0]).wait()
    pltpu.make_async_copy(i_buf.at[slot], i_buf.at[slot], sem.at[slot, 1]).wait()

    # Cross-step double buffering: prefetch tile step+1 into the other slot
    # while this tile's product / reduction / store runs.
    @pl.when(step + 1 < nsteps)
    def _prefetch():
        issue_tile(step + 1, 1 - slot)

    u = u_buf[slot]
    v = i_buf[slot]
    if u.dtype == jnp.bfloat16 and v.dtype == jnp.bfloat16:
        prod = u * v                # bf16 VPU on v6e/v7x; f32 accumulation in the matmul
    else:
        prod = u.astype(jnp.float32) * v.astype(jnp.float32)
    # NOTE: for D < 128 each (tb, D) tile wastes 1 - D/128 of every lane vector;
    # if the table layout is controllable prefer D >= 128 (or pack rows).
    out_ref[...] = _reduce_rows_lane_dense(prod)


# --------------------------------------------------------------------------
# Wrappers
# --------------------------------------------------------------------------
def _pick_batch_tile(batch):
    """Largest lane-dense tile (<= 512) dividing the batch, preferring grid >= 2."""
    if batch <= 128:
        return batch
    fallback = None
    for cand in (512, 256, 128):
        if cand <= batch and batch % cand == 0:
            if batch // cand >= 2:     # keep >= 2 tiles so v7x megacore can split
                return cand
            if fallback is None:
                fallback = cand
    return fallback if fallback is not None else batch


def _mf_small_tables(u_idx, i_idx, user_table, item_table, tb):
    batch = u_idx.shape[0]
    n_users, d = user_table.shape
    n_items = item_table.shape[0]
    out = pl.pallas_call(
        _mf_small_kernel,
        out_shape=jax.ShapeDtypeStruct((1, batch), jnp.float32),
        grid_spec=pltpu.PrefetchScalarGridSpec(
            num_scalar_prefetch=0,
            grid=(batch // tb,),
            in_specs=[
                pl.BlockSpec((tb, 1), lambda b: (b, 0)),
                pl.BlockSpec((tb, 1), lambda b: (b, 0)),
                # Constant block index: tables DMA'd into VMEM once, revisited.
                pl.BlockSpec((n_users, d), lambda b: (0, 0)),
                pl.BlockSpec((n_items, d), lambda b: (0, 0)),
            ],
            out_specs=pl.BlockSpec((1, tb), lambda b: (0, b)),
        ),
        compiler_params=pltpu.CompilerParams(
            dimension_semantics=("parallel",),       # v7x: both TensorCores
            vmem_limit_bytes=48 * 1024 * 1024,
        ),
    )(u_idx.reshape(batch, 1), i_idx.reshape(batch, 1), user_table, item_table)
    return out.reshape(batch)


def _mf_hbm_gather(u_idx, i_idx, user_table, item_table, tb):
    batch = u_idx.shape[0]
    _, d = user_table.shape
    out = pl.pallas_call(
        _mf_gather_kernel,
        out_shape=jax.ShapeDtypeStruct((1, batch), jnp.float32),
        grid_spec=pltpu.PrefetchScalarGridSpec(
            num_scalar_prefetch=2,                    # u_idx, i_idx -> SMEM
            grid=(batch // tb,),
            in_specs=[
                pl.BlockSpec(memory_space=pl.ANY),    # user table stays in HBM
                pl.BlockSpec(memory_space=pl.ANY),    # item table stays in HBM
            ],
            out_specs=pl.BlockSpec((1, tb), lambda b, uidx, iidx: (0, b)),
            scratch_shapes=[
                pltpu.VMEM((2, tb, d), user_table.dtype),   # double-buffered user rows
                pltpu.VMEM((2, tb, d), item_table.dtype),   # double-buffered item rows
                pltpu.SemaphoreType.DMA((2, 2)),            # [slot, table]
            ],
        ),
        # Cross-step prefetch needs sequential traversal: a "parallel" megacore
        # split would leave the second core's first tile un-primed (deadlock).
        compiler_params=pltpu.CompilerParams(dimension_semantics=("arbitrary",)),
    )(u_idx, i_idx, user_table, item_table)
    return out.reshape(batch)


def mf_forward(user_indices, item_indices, user_table, item_table, *,
               tb=None, force_gather=False):
    """MatrixFactorization.forward == torch.sum(u_emb * i_emb, dim=1)."""
    batch = user_indices.shape[0]
    n_users, _ = user_table.shape
    n_items, _ = item_table.shape
    if tb is None:
        tb = _pick_batch_tile(batch)
    assert batch % tb == 0, "batch must be a multiple of the batch tile"
    assert tb == batch or tb % 128 == 0, \
        "batch tile must be lane-dense (multiple of 128) or cover the whole batch"

    # TODO(synk): nn.Embedding raises on out-of-range indices; here they are
    # clamped so a bad index cannot drive an out-of-bounds DMA / gather.
    u_idx = jnp.clip(user_indices.astype(jnp.int32), 0, n_users - 1)
    i_idx = jnp.clip(item_indices.astype(jnp.int32), 0, n_items - 1)

    table_bytes = (user_table.size * user_table.dtype.itemsize +
                   item_table.size * item_table.dtype.itemsize)
    if not force_gather and table_bytes <= _VMEM_TABLE_BUDGET_BYTES:
        return _mf_small_tables(u_idx, i_idx, user_table, item_table, tb)
    return _mf_hbm_gather(u_idx, i_idx, user_table, item_table, tb)


if __name__ == "__main__":
    # Small, deterministic setup consistent with MatrixFactorization.__init__.
    num_users, num_items, embedding_dim = 64, 96, 32
    batch = 256   # -> batch tile 128, grid of 2 (exercises pipelining / megacore)

    key = jax.random.PRNGKey(0)
    k_u, k_i, k_ui, k_ii = jax.random.split(key, 4)

    # nn.Embedding default init: N(0, 1)
    embed_user = jax.random.normal(k_u, (num_users, embedding_dim), dtype=jnp.float32)
    embed_item = jax.random.normal(k_i, (num_items, embedding_dim), dtype=jnp.float32)

    user_indices = jax.random.randint(k_ui, (batch,), 0, num_users, dtype=jnp.int32)
    item_indices = jax.random.randint(k_ii, (batch,), 0, num_items, dtype=jnp.int32)

    # Pure-JAX reference of the PyTorch forward semantics.
    ref = jnp.sum(embed_user[user_indices] * embed_item[item_indices], axis=1)

    # Fast path (tables fit in VMEM -> one-hot MXU gather).
    scores_small = jax.block_until_ready(
        mf_forward(user_indices, item_indices, embed_user, embed_item))
    assert scores_small.shape == (batch,)
    assert jnp.allclose(scores_small, ref, atol=1e-3, rtol=1e-3), \
        float(jnp.max(jnp.abs(scores_small - ref)))

    # Large-table path (forced): HBM-resident tables + double-buffered row gather.
    scores_gather = jax.block_until_ready(
        mf_forward(user_indices, item_indices, embed_user, embed_item,
                   force_gather=True))
    assert scores_gather.shape == (batch,)
    assert jnp.allclose(scores_gather, ref, atol=1e-3, rtol=1e-3), \
        float(jnp.max(jnp.abs(scores_gather - ref)))

    print("KERNEL_OK")
</pallas_src>

<mosaic_0001>
module attributes {stable_mosaic.version = 11 : i64} {
  func.func @_mf_small_kernel(%arg0: i32, %arg1: memref<128x1xi32, #tpu.memory_space<vmem>>, %arg2: memref<128x1xi32, #tpu.memory_space<vmem>>, %arg3: memref<64x32xf32, #tpu.memory_space<vmem>>, %arg4: memref<96x32xf32, #tpu.memory_space<vmem>>, %arg5: memref<1x128xf32, #tpu.memory_space<vmem>>) attributes {dimension_semantics = [#tpu.dimension_semantics<parallel>], iteration_bounds = array<i64: 2>, scalar_prefetch = 0 : i64, scratch_operands = 0 : i64, tpu.core_type = #tpu.core_type<tc>, window_params = [{transform_indices = @transform_0, window_bounds = array<i64: 128, 1>}, {transform_indices = @transform_1, window_bounds = array<i64: 128, 1>}, {pipeline_mode = #tpu.pipeline_mode<synchronous>, transform_indices = @transform_2, window_bounds = array<i64: 64, 32>}, {pipeline_mode = #tpu.pipeline_mode<synchronous>, transform_indices = @transform_3, window_bounds = array<i64: 96, 32>}, {transform_indices = @transform_4, window_bounds = array<i64: 1, 128>}]} {
    %c0 = arith.constant 0 : index
    %c0_0 = arith.constant 0 : index
    %0 = vector.load %arg1[%c0, %c0_0] : memref<128x1xi32, #tpu.memory_space<vmem>>, vector<128x1xi32>
    %1 = tpu.iota {dimensions = array<i32: 1>} : vector<128x64xi32>
    %2 = vector.broadcast %0 : vector<128x1xi32> to vector<128x64xi32>
    %3 = arith.cmpi eq, %2, %1 : vector<128x64xi32>
    %4 = arith.extui %3 : vector<128x64xi1> to vector<128x64xi32>
    %5 = arith.sitofp %4 : vector<128x64xi32> to vector<128x64xf32>
    %c0_1 = arith.constant 0 : index
    %c0_2 = arith.constant 0 : index
    %6 = vector.load %arg2[%c0_1, %c0_2] : memref<128x1xi32, #tpu.memory_space<vmem>>, vector<128x1xi32>
    %7 = tpu.iota {dimensions = array<i32: 1>} : vector<128x96xi32>
    %8 = vector.broadcast %6 : vector<128x1xi32> to vector<128x96xi32>
    %9 = arith.cmpi eq, %8, %7 : vector<128x96xi32>
    %10 = arith.extui %9 : vector<128x96xi1> to vector<128x96xi32>
    %11 = arith.sitofp %10 : vector<128x96xi32> to vector<128x96xf32>
    %c0_3 = arith.constant 0 : index
    %c0_4 = arith.constant 0 : index
    %12 = vector.load %arg3[%c0_3, %c0_4] : memref<64x32xf32, #tpu.memory_space<vmem>>, vector<64x32xf32>
    %cst = arith.constant dense<0.000000e+00> : vector<128x32xf32>
    %13 = tpu.matmul %5, %12, %cst {dimension_numbers = #tpu.dot_dimension_numbers<[1], [0], [0], [1], [0, 0, 1, 1], [], []>} : vector<128x64xf32>, vector<64x32xf32>, vector<128x32xf32> -> vector<128x32xf32>
    %c0_5 = arith.constant 0 : index
    %c0_6 = arith.constant 0 : index
    %14 = vector.load %arg4[%c0_5, %c0_6] : memref<96x32xf32, #tpu.memory_space<vmem>>, vector<96x32xf32>
    %cst_7 = arith.constant dense<0.000000e+00> : vector<128x32xf32>
    %15 = tpu.matmul %11, %14, %cst_7 {dimension_numbers = #tpu.dot_dimension_numbers<[1], [0], [0], [1], [0, 0, 1, 1], [], []>} : vector<128x96xf32>, vector<96x32xf32>, vector<128x32xf32> -> vector<128x32xf32>
    %16 = arith.mulf %13, %15 : vector<128x32xf32>
    %cst_8 = arith.constant 1.000000e+00 : f32
    %17 = vector.broadcast %cst_8 : f32 to vector<1x32xf32>
    %cst_9 = arith.constant dense<0.000000e+00> : vector<1x128xf32>
    %18 = tpu.matmul %17, %16, %cst_9 {dimension_numbers = #tpu.dot_dimension_numbers<[1], [1], [0], [0], [0, 0, 1, 0], [], []>} : vector<1x32xf32>, vector<128x32xf32>, vector<1x128xf32> -> vector<1x128xf32>
    %c0_10 = arith.constant 0 : index
    %c0_11 = arith.constant 0 : index
    %19 = vector.load %arg5[%c0_10, %c0_11] : memref<1x128xf32, #tpu.memory_space<vmem>>, vector<1x128xf32>
    tpu.vector_store %arg5[%c0_10, %c0_11], %18 {strides = array<i32>} : memref<1x128xf32, #tpu.memory_space<vmem>>, vector<1x128xf32>,
    return
  }
  func.func @transform_0(%arg0: i32) -> (i32, i32) {
    %c0_i32 = arith.constant 0 : i32
    %c0_i32_0 = arith.constant 0 : i32
    return %arg0, %c0_i32 : i32, i32
  }
  func.func @transform_1(%arg0: i32) -> (i32, i32) {
    %c0_i32 = arith.constant 0 : i32
    %c0_i32_0 = arith.constant 0 : i32
    return %arg0, %c0_i32 : i32, i32
  }
  func.func @transform_2(%arg0: i32) -> (i32, i32) {
    %c0_i32 = arith.constant 0 : i32
    %c0_i32_0 = arith.constant 0 : i32
    %c0_i32_1 = arith.constant 0 : i32
    return %c0_i32, %c0_i32_0 : i32, i32
  }
  func.func @transform_3(%arg0: i32) -> (i32, i32) {
    %c0_i32 = arith.constant 0 : i32
    %c0_i32_0 = arith.constant 0 : i32
    %c0_i32_1 = arith.constant 0 : i32
    return %c0_i32, %c0_i32_0 : i32, i32
  }
  func.func @transform_4(%arg0: i32) -> (i32, i32) {
    %c0_i32 = arith.constant 0 : i32
    %c0_i32_0 = arith.constant 0 : i32
    return %c0_i32, %arg0 : i32, i32
  }
}

</mosaic_0001>

<bundles_post_ra>
// kernel: tpu_custom_call.1
= control target key start
LH: loop header
LB: loop body
LE: loop exit
PB: predicated region body
PF: predicated region fallthrough
CT: control target
= control target key end

     0   :  { %9 = vsyncpa [#allocation3], 0  ;;  %s1908_s0 = inlined_call_operand.vmem [shape: s32[256,1], index: 0, kind: input, shape index: {}]   ;;  %s1909_s1 = inlined_call_operand.vmem [shape: s32[256,1], index: 1, kind: input, shape index: {}]   ;;  %s1910_s2 = inlined_call_operand.vmem [shape: f32[64,32], index: 2, kind: input, shape index: {}]   ;;  %s1911_s3 = inlined_call_operand.vmem [shape: f32[96,32], index: 3, kind: input, shape index: {}]   ;;  %s1912_s4 = inlined_call_operand.hbm [shape: f32[1,256], index: 4, kind: output, shape index: {}]  }
   0x1   :  { %11 = vsyncpa [#allocation3 + $0x1], 0  ;;  %s1569_s15 = smov 0   ;;  %s1571_s16 = smov 0  }
   0x2   :  { %s1573_s17 = smov 0   ;;  %s1575_s18 = smov 0  }
   0x3 LB: > { %s1071_s19 = sadd.s32 4294967295, %s1536_s18   ;;  %s1072_s20 = sadd.s32 4294967294, %s1536_s18   ;;  %s1536_s18 = sphi %s1575_s18, %s1920_s18   ;;  %s1532_s17 = sphi %s1573_s17, %s1919_s17   ;;  %s1528_s16 = sphi %s1571_s16, %s1918_s16   ;;  %s1524_s15 = sphi %s1569_s15, %s1917_s15  }
   0x4   : > { %s1592_s21 = sadd.s32 1, %s1536_s18   ;;  %s118_s22 = sadd.s32 1, %s1532_s17 }
   0x5   : > { %s115_s23 = ssub.s32 %s1536_s18, %s1592_s21  ;;  %p128_p0 = scmp.ne.s32.totalorder %s1532_s17, %s1528_s16 }
   0x6   : > { %p116_p1 = scmp.eq.s32.totalorder %s115_s23, 0  ;;  %p129_p2 = scmp.eq.s32.totalorder %s1071_s19, 1 }
   0x7   : > { %p134_p3 = scmp.ne.s32.totalorder %s1528_s16, %s1524_s15  ;;  %p135_p4 = scmp.eq.s32.totalorder %s1072_s20, 1 }
   0x8   : > { %s1602_s24 = scalar_select %p116_p1, %s1532_s17, %s118_s22  }
   0x9   : > { %p1604_p5 = por %p129_p2, %p128_p0  ;;  %p1608_p6 = por %p135_p4, %p134_p3 }
   0xa   : > { %p1075_p7 = scmp.ge.s32.totalorder %s1536_s18, 1  ;;  %p177_p8 = scmp.lt.s32.totalorder %s1536_s18, 3 }
   0xc   : > { %p178_p9 = pnand %p1075_p7, %p177_p8 }
   0xd   : > { %s1614_s27 = sshll.u32 (!%p178_p9), %s1071_s19, 4  ;;  %v445_v0 = vld [vmem:[%s1910_s2] sm:$0xff] (!%p178_p9)  ;;  %v446_v1 = vld [vmem:[%s1910_s2 + $0x8] sm:$0xff] (!%p178_p9)  ;;  %v447_v2 = vld [vmem:[%s1910_s2 + $0x10] sm:$0xff] (!%p178_p9)  ;;  %v1538_v3 = vmov (!%p178_p9), 0   ;;  %v235_v48 = vlaneseq (!%p178_p9)  ;;  %vm453_vm0 = vcmask (!%p178_p9), 523264  }
   0xe   : > { %181 = sbr.rel (%p178_p9) target bundleno = 698 (0x2ba), region = 36  ;;  %1473 = vset.pattern.permute.xlu1 (!%p178_p9), %v1538_v3  ;;  %1472 = vset.pattern.permute.xlu0 (!%p178_p9), %v1538_v3  ;;  %p208_p10 = scmp.lt.s32.totalorder (!%p178_p9), %s1614_s27, 31  ;;  %v1356_v4 = vpack.c.bf16 (!%p178_p9), %v446_v1, %v445_v0  ;;  %v448_v5 = vld [vmem:[%s1910_s2 + $0x18] sm:$0xff] (!%p178_p9)  ;;  %v449_v7 = vld [vmem:[%s1910_s2 + $0x20] sm:$0xff] (!%p178_p9)  ;;  %v450_v8 = vld [vmem:[%s1910_s2 + $0x28] sm:$0xff] (!%p178_p9)  ;;  %v1539_v52 = vmov (!%p178_p9), 0.0  }
   0xf   : > { %v1360_v6 = vpack.c.bf16 (!%p178_p9), %v448_v5, %v447_v2  ;;  %v1364_v9 = vpack.c.bf16 (!%p178_p9), %v450_v8, %v449_v7  ;;  %v451_v18 = vld [vmem:[%s1910_s2 + $0x30] sm:$0xff] (!%p178_p9)  ;;  %v452_v19 = vld [vmem:[%s1910_s2 + $0x38] sm:$0xff] (!%p178_p9)  ;;  %v647_v20 = vld [vmem:[%s1911_s3] sm:$0xff] (!%p178_p9)  ;;  %v1700_v49 = vand.u32 (!%p178_p9), 127, %v235_v48  ;;  %s205_s20 = sand.u32 (!%p178_p9), 1, %s1528_s16   ;;  %s1868_s30 = scalar_lea.hbm (!%p178_p9), %s1912_s4, %s1614_s27 }
  0x10   : > { %1357 = vmatprep.subr.bf16.mxu1 (!%p178_p9), %v1356_v4  ;;  %v648_v21 = vld [vmem:[%s1911_s3 + $0x8] sm:$0xff] (!%p178_p9)  ;;  %v1368_v22 = vpack.c.bf16 (!%p178_p9), %v452_v19, %v451_v18  ;;  %v649_v54 = vld [vmem:[%s1911_s3 + $0x10] sm:$0xff] (!%p178_p9)  ;;  %v650_v55 = vld [vmem:[%s1911_s3 + $0x18] sm:$0xff] (!%p178_p9)  ;;  %s206_s22 = scalar_lea.vmem (!%p178_p9), [#allocation2], %s205_s20  ;;  %s993_s5 = scalar_lea.sflag (!%p178_p9), [#allocation3], %s205_s20 }
  0x11   : > { %1359 = vmatpush3.bf16.msra.mxu1 (!%p178_p9), %v1356_v4  ;;  %v1666_v23 = vpack.c.bf16 (!%p178_p9), %v648_v21, %v647_v20  ;;  %v1376_v59 = vpack.c.bf16 (!%p178_p9), %v650_v55, %v649_v54  ;;  %v651_v61 = vld [vmem:[%s1911_s3 + $0x20] sm:$0xff] (!%p178_p9)  ;;  %v652_v62 = vld [vmem:[%s1911_s3 + $0x28] sm:$0xff] (!%p178_p9)  ;;  %v653_v4 = vld [vmem:[%s1911_s3 + $0x30] sm:$0xff] (!%p178_p9)  ;;  %s1543_s7 = smov (!%p178_p9), [#allocation2]  }
  0x12   : > { %1361 = vmatprep.subr.bf16.mxu1 (!%p178_p9), %v1360_v6  ;;  %v1380_v1 = vpack.c.bf16 (!%p178_p9), %v652_v62, %v651_v61  ;;  %v654_v5 = vld [vmem:[%s1911_s3 + $0x38] sm:$0xff] (!%p178_p9)  ;;  %v657_v18 = vld [vmem:[%s1911_s3 + $0x50] sm:$0xff] (!%p178_p9)  ;;  %s1478_s8 = sshll.u32 (!%p178_p9), %s1543_s7, 4  ;;  %s1479_s8 = int_to_ptr.vmem [resolvable:$false] %s1478_s8 }
  0x13   : > { %v1384_v8 = vpack.c.bf16 (!%p178_p9), %v654_v5, %v653_v4  ;;  %v658_v19 = vld [vmem:[%s1911_s3 + $0x58] sm:$0xff] (!%p178_p9)  ;;  %v1540_v4 = vmov (!%p178_p9), 0.0|0.0   ;;  %s1480_s9 = scalar_lea.vmem (!%p178_p9), %s1479_s8, 32 }
  0x14   : > { %1396 = vmatprep.subr.bf16.mxu0 (!%p178_p9), %v1540_v4 }
  0x15   : > { %s1630_s10 = scalar_select %p208_p10, %s1614_s27, 31  ;;  %1363 = vmatpush3.bf16.msra.mxu1 %v1360_v6 }
  0x16   : > { %1365 = vmatprep.subr.bf16.mxu1 %v1364_v9 }
  0x17   : > { %s1077_s19 = sshll.u32 %s1630_s10, 3 }
  0x18   : > { %s1644_s23 = scalar_lea.vmem %s1908_s0, %s1077_s19  ;;  %s1682_s13 = scalar_lea.vmem %s1909_s1, %s1077_s19 }
  0x19   : > { %v221_v10 = vld [vmem:[%s1644_s23 + $0x10] sm:$0xff]  ;;  %v219_v11 = vld [vmem:[%s1644_s23] sm:$0xff]  ;;  %v222_v12 = vld [vmem:[%s1644_s23 + $0x18] sm:$0xff]  ;;  %1367 = vmatpush3.bf16.msra.mxu1 %v1364_v9 }
  0x1a   : > { %244 = vperm.xlu1 %1473, %v221_v10   ;;  %238 = vperm.xlu0 %1472, %v219_v11   ;;  %v220_v13 = vld [vmem:[%s1644_s23 + $0x8] sm:$0xff]  ;;  %v223_v15 = vld [vmem:[%s1644_s23 + $0x20] sm:$0xff]  ;;  %v226_v16 = vld [vmem:[%s1644_s23 + $0x38] sm:$0xff] }
  0x1b   : > { %v224_v14 = vld [vmem:[%s1644_s23 + $0x28] sm:$0xff]  ;;  %v225_v17 = vld [vmem:[%s1644_s23 + $0x30] sm:$0xff]  ;;  %v227_v25 = vld [vmem:[%s1644_s23 + $0x40] sm:$0xff]  ;;  %1369 = vmatprep.subr.bf16.mxu1 %v1368_v22 }
  0x1c   : > { %v228_v24 = vld [vmem:[%s1644_s23 + $0x48] sm:$0xff]  ;;  %v230_v26 = vld [vmem:[%s1644_s23 + $0x58] sm:$0xff]  ;;  %v229_v27 = vld [vmem:[%s1644_s23 + $0x50] sm:$0xff] }
  0x1d   : > { %1371 = vmatpush3.bf16.msra.mxu1 %v1368_v22  ;;  %v232_v28 = vld [vmem:[%s1644_s23 + $0x68] sm:$0xff]  ;;  %v231_v29 = vld [vmem:[%s1644_s23 + $0x60] sm:$0xff]  ;;  %v234_v30 = vld [vmem:[%s1644_s23 + $0x78] sm:$0xff]  ;;  %v1392_v22 = vpack.c.bf16 %v658_v19, %v657_v18 }
  0x1e   : > { %247 = vperm.xlu1 %1473, %v222_v12   ;;  %241 = vperm.xlu0 %1472, %v220_v13   ;;  %v233_v31 = vld [vmem:[%s1644_s23 + $0x70] sm:$0xff]  ;;  %v334_v32 = vld [vmem:[%s1682_s13 + $0x8] sm:$0xff]  ;;  %v333_v33 = vld [vmem:[%s1682_s13] sm:$0xff]  ;;  %s1005_s23 = sshll.u32 %s206_s22, 4  ;;  %s1862_s23 = int_to_ptr.vmem [resolvable:$true] %s1005_s23 }
  0x1f   : > { %1373 = vmatprep.subr.bf16.mxu1 %v1666_v23  ;;  %v336_v34 = vld [vmem:[%s1682_s13 + $0x18] sm:$0xff]  ;;  %v335_v35 = vld [vmem:[%s1682_s13 + $0x10] sm:$0xff]  ;;  %v338_v36 = vld [vmem:[%s1682_s13 + $0x28] sm:$0xff]  ;;  %s1474_s6 = scalar_lea.vmem %s1862_s23, 16  ;;  %p1481_p0 = scmp.lt.s32.totalorder %s1862_s23, %s1479_s8 }
  0x20   : > { %v337_v37 = vld [vmem:[%s1682_s13 + $0x20] sm:$0xff]  ;;  %v340_v38 = vld [vmem:[%s1682_s13 + $0x38] sm:$0xff]  ;;  %v339_v39 = vld [vmem:[%s1682_s13 + $0x30] sm:$0xff]  ;;  %p1475_p11 = scmp.ne.s32.totalorder %s1862_s23, %s1474_s6  ;;  %p1482_p1 = scmp.lt.s32.totalorder %s1480_s9, %s1474_s6 }
  0x21   : > { %v342_v40 = vld [vmem:[%s1682_s13 + $0x48] sm:$0xff]  ;;  %v341_v41 = vld [vmem:[%s1682_s13 + $0x40] sm:$0xff]  ;;  %v344_v42 = vld [vmem:[%s1682_s13 + $0x58] sm:$0xff] }
  0x22   : > { %253 = vperm.xlu1 %1473, %v224_v14   ;;  %250 = vperm.xlu0 %1472, %v223_v15   ;;  %v343_v43 = vld [vmem:[%s1682_s13 + $0x50] sm:$0xff]  ;;  %v346_v44 = vld [vmem:[%s1682_s13 + $0x68] sm:$0xff]  ;;  %v345_v45 = vld [vmem:[%s1682_s13 + $0x60] sm:$0xff]  ;;  %p1476_p12 = pnand %p1475_p11, %p1604_p5  ;;  %p1483_p2 = por %p1482_p1, %p1481_p0 }
  0x23   : > { %v348_v46 = vld [vmem:[%s1682_s13 + $0x78] sm:$0xff]  ;;  %v347_v47 = vld [vmem:[%s1682_s13 + $0x70] sm:$0xff]  ;;  %v655_v11 = vld [vmem:[%s1911_s3 + $0x40] sm:$0xff] }
  0x24   : > { %v656_v12 = vld [vmem:[%s1911_s3 + $0x48] sm:$0xff]  ;;  %p1477_p13 = pneg %p1476_p12 }
  0x25   : > { %v1388_v15 = vpack.c.bf16 %v656_v12, %v655_v11 }
  0x26   : > { %259 = vperm.xlu1 %1473, %v226_v16   ;;  %256 = vperm.xlu0 %1472, %v225_v17   ;;  %p1484_p3 = pnand %p1483_p2, %p1477_p13 }
  0x2a   : > { %265 = vperm.xlu1 %1473, %v228_v24   ;;  %262 = vperm.xlu0 %1472, %v227_v25  }
  0x2e   : > { %271 = vperm.xlu1 %1473, %v230_v26   ;;  %268 = vperm.xlu0 %1472, %v229_v27  }
  0x32   : > { %277 = vperm.xlu1 %1473, %v232_v28   ;;  %274 = vperm.xlu0 %1472, %v231_v29  }
  0x36   : > { %283 = vperm.xlu1 %1473, %v234_v30   ;;  %280 = vperm.xlu0 %1472, %v233_v31  }
  0x3a   : > { %353 = vperm.xlu1 %1473, %v334_v32   ;;  %350 = vperm.xlu0 %1472, %v333_v33  }
  0x3e   : > { %359 = vperm.xlu1 %1473, %v336_v34   ;;  %356 = vperm.xlu0 %1472, %v335_v35  }
  0x42   : > { %365 = vperm.xlu1 %1473, %v338_v36   ;;  %362 = vperm.xlu0 %1472, %v337_v37  }
  0x46   : > { %371 = vperm.xlu1 %1473, %v340_v38   ;;  %368 = vperm.xlu0 %1472, %v339_v39  }
  0x4a   : > { %377 = vperm.xlu1 %1473, %v342_v40   ;;  %374 = vperm.xlu0 %1472, %v341_v41  }
  0x4e   : > { %383 = vperm.xlu1 %1473, %v344_v42   ;;  %380 = vperm.xlu0 %1472, %v343_v43  }
  0x52   : > { %389 = vperm.xlu1 %1473, %v346_v44   ;;  %386 = vperm.xlu0 %1472, %v345_v45  }
  0x56   : > { %395 = vperm.xlu1 %1473, %v348_v46   ;;  %392 = vperm.xlu0 %1472, %v347_v47  }
  0x99   : > { %v245_v50 = vpop.permute.xlu1 %244  ;;  %v239_v51 = vpop.permute.xlu0 %238 }
  0x9a   : > { %vm285_vm1 = vcmp.eq.s32.totalorder %v239_v51, %v1700_v49  ;;  %vm287_vm2 = vcmp.eq.s32.totalorder %v245_v50, %v1700_v49 }
  0x9b   : > { %v1080_v53 = vsel %vm285_vm1, 1.0, %v1539_v52  ;;  %v1082_v58 = vsel %vm287_vm2, 1.0, %v1539_v52 }
  0x9c   : > { %1249 = vmatprep.mubr.msk.f32.mxu1 %vm453_vm0, %v1080_v53 }
  0x9d   : > { %v248_v56 = vpop.permute.xlu1 %247  ;;  %v242_v57 = vpop.permute.xlu0 %241 }
  0x9e   : > { %vm286_vm3 = vcmp.eq.s32.totalorder %v242_v57, %v1700_v49  ;;  %vm288_vm4 = vcmp.eq.s32.totalorder %v248_v56, %v1700_v49 }
  0x9f   : > { %v1081_v60 = vsel %vm286_vm3, 1.0, %v1539_v52  ;;  %v1083_v2 = vsel %vm288_vm4, 1.0, %v1539_v52  ;;  %vm659_vm3 = vcmask 785408  }
  0xa0   : > { %1250 = vmatmul.mubr.msk.f32.vlgmr.msra.gmra.mrb[0].mxu1 %vm453_vm0, %v1081_v60 }
  0xa1   : > { %1375 = vmatpush3.bf16.msra.mxu1 %v1666_v23  ;;  %v254_v63 = vpop.permute.xlu1 %253  ;;  %1252 = vmatprep.mubr.msk.f32.mxu1 %vm453_vm0, %v1082_v58  ;;  %v251_v0 = vpop.permute.xlu0 %250 }
  0xa2   : > { %vm289_vm5 = vcmp.eq.s32.totalorder %v251_v0, %v1700_v49  ;;  %1377 = vmatprep.subr.bf16.mxu1 %v1376_v59  ;;  %vm290_vm6 = vcmp.eq.s32.totalorder %v254_v63, %v1700_v49 }
  0xa3   : > { %v1084_v3 = vsel %vm289_vm5, 1.0, %v1539_v52  ;;  %v1085_v9 = vsel %vm290_vm6, 1.0, %v1539_v52 }
  0xa4   : > { %1253 = vmatmul.mubr.msk.f32.gmra.mrb[2].mxu1 %vm453_vm0, %v1083_v2 }
  0xa5   : > { %v260_v6 = vpop.permute.xlu1 %259  ;;  %1255 = vmatprep.mubr.msk.f32.mxu1 %vm453_vm0, %v1084_v3  ;;  %v257_v7 = vpop.permute.xlu0 %256  ;;  %1379 = vmatpush3.bf16.msra.mxu1 %v1376_v59 }
  0xa6   : > { %vm291_vm7 = vcmp.eq.s32.totalorder %v257_v7, %v1700_v49  ;;  %1381 = vmatprep.subr.bf16.mxu1 %v1380_v1  ;;  %vm292_vm8 = vcmp.eq.s32.totalorder %v260_v6, %v1700_v49 }
  0xa7   : > { %v1086_v10 = vsel %vm291_vm7, 1.0, %v1539_v52  ;;  %v1087_v16 = vsel %vm292_vm8, 1.0, %v1539_v52 }
  0xa8   : > { %1256 = vmatmul.mubr.msk.f32.gmra.mrb[4].mxu1 %vm453_vm0, %v1085_v9 }
  0xa9   : > { %v266_v13 = vpop.permute.xlu1 %265  ;;  %1258 = vmatprep.mubr.msk.f32.mxu1 %vm453_vm0, %v1086_v10  ;;  %v263_v14 = vpop.permute.xlu0 %262  ;;  %1383 = vmatpush3.bf16.msra.mxu1 %v1380_v1 }
  0xaa   : > { %vm293_vm9 = vcmp.eq.s32.totalorder %v263_v14, %v1700_v49  ;;  %1385 = vmatprep.subr.bf16.mxu1 %v1384_v8  ;;  %vm294_vm10 = vcmp.eq.s32.totalorder %v266_v13, %v1700_v49 }
  0xab   : > { %v1088_v17 = vsel %vm293_vm9, 1.0, %v1539_v52  ;;  %v1089_v23 = vsel %vm294_vm10, 1.0, %v1539_v52 }
  0xac   : > { %1259 = vmatmul.mubr.msk.f32.gmra.mrb[6].mxu1 %vm453_vm0, %v1087_v16 }
  0xad   : > { %v272_v20 = vpop.permute.xlu1 %271  ;;  %1261 = vmatprep.mubr.msk.f32.mxu1 %vm453_vm0, %v1088_v17  ;;  %v269_v21 = vpop.permute.xlu0 %268  ;;  %1387 = vmatpush3.bf16.msra.mxu1 %v1384_v8 }
  0xae   : > { %vm295_vm11 = vcmp.eq.s32.totalorder %v269_v21, %v1700_v49  ;;  %1389 = vmatprep.subr.bf16.mxu1 %v1388_v15  ;;  %vm296_vm12 = vcmp.eq.s32.totalorder %v272_v20, %v1700_v49 }
  0xaf   : > { %v1090_v24 = vsel %vm295_vm11, 1.0, %v1539_v52  ;;  %v1091_v27 = vsel %vm296_vm12, 1.0, %v1539_v52 }
  0xb0   : > { %1262 = vmatmul.mubr.msk.f32.gmra.mrb[8].mxu1 %vm453_vm0, %v1089_v23 }
  0xb1   : > { %v278_v25 = vpop.permute.xlu1 %277  ;;  %1264 = vmatprep.mubr.msk.f32.mxu1 %vm453_vm0, %v1090_v24  ;;  %v275_v26 = vpop.permute.xlu0 %274  ;;  %1391 = vmatpush3.bf16.msra.mxu1 %v1388_v15 }
  0xb2   : > { %vm297_vm13 = vcmp.eq.s32.totalorder %v275_v26, %v1700_v49  ;;  %1393 = vmatprep.subr.bf16.mxu1 %v1392_v22  ;;  %vm298_vm14 = vcmp.eq.s32.totalorder %v278_v25, %v1700_v49 }
  0xb3   : > { %v1092_v28 = vsel %vm297_vm13, 1.0, %v1539_v52  ;;  %v1093_v31 = vsel %vm298_vm14, 1.0, %v1539_v52 }
  0xb4   : > { %1265 = vmatmul.mubr.msk.f32.gmra.mrb[10].mxu1 %vm453_vm0, %v1091_v27 }
  0xb5   : > { %v284_v29 = vpop.permute.xlu1 %283  ;;  %1267 = vmatprep.mubr.msk.f32.mxu1 %vm453_vm0, %v1092_v28  ;;  %v281_v30 = vpop.permute.xlu0 %280  ;;  %1395 = vmatpush3.bf16.msra.mxu1 %v1392_v22 }
  0xb6   : > { %vm299_vm15 = vcmp.eq.s32.totalorder %v281_v30, %v1700_v49  ;;  %vm300_vm1 = vcmp.eq.s32.totalorder %v284_v29, %v1700_v49 }
  0xb7   : > { %v1094_v32 = vsel %vm299_vm15, 1.0, %v1539_v52  ;;  %v1095_v35 = vsel %vm300_vm1, 1.0, %v1539_v52 }
  0xb8   : > { %1268 = vmatmul.mubr.msk.f32.gmra.mrb[12].mxu1 %vm453_vm0, %v1093_v31 }
  0xb9   : > { %v354_v33 = vpop.permute.xlu1 %353  ;;  %1270 = vmatprep.mubr.msk.f32.mxu1 %vm453_vm0, %v1094_v32  ;;  %v351_v34 = vpop.permute.xlu0 %350 }
  0xba   : > { %vm397_vm2 = vcmp.eq.s32.totalorder %v351_v34, %v1700_v49  ;;  %vm398_vm4 = vcmp.eq.s32.totalorder %v354_v33, %v1700_v49 }
  0xbb   : > { %v1096_v36 = vsel %vm397_vm2, 1.0, %v1539_v52  ;;  %v1097_v39 = vsel %vm398_vm4, 1.0, %v1539_v52  ;;  %vm1541_vm4 = vmmov 0  }
  0xbc   : > { %1271 = vmatmul.mubr.msk.f32.gmra.mrb[14].mxu1 %vm453_vm0, %v1095_v35  ;;  %1353 = vmatprep.mubr.msk.f32.mxu0 %vm1541_vm4, %v1539_v52 }
  0xbd   : > { %v360_v37 = vpop.permute.xlu1 %359  ;;  %1297 = vmatprep.mubr.msk.f32.mxu1 %vm659_vm3, %v1096_v36  ;;  %v357_v38 = vpop.permute.xlu0 %356 }
  0xbe   : > { %vm399_vm5 = vcmp.eq.s32.totalorder %v357_v38, %v1700_v49  ;;  %vm400_vm6 = vcmp.eq.s32.totalorder %v360_v37, %v1700_v49 }
  0xbf   : > { %v1098_v40 = vsel %vm399_vm5, 1.0, %v1539_v52  ;;  %v1099_v43 = vsel %vm400_vm6, 1.0, %v1539_v52 }
  0xc0   : > { %1298 = vmatmul.mubr.msk.f32.vlgmr.msra.gmra.mrb[16].mxu1 %vm659_vm3, %v1097_v39 }
  0xc1   : > { %v366_v41 = vpop.permute.xlu1 %365  ;;  %1300 = vmatprep.mubr.msk.f32.mxu1 %vm659_vm3, %v1098_v40  ;;  %v363_v42 = vpop.permute.xlu0 %362 }
  0xc2   : > { %vm401_vm0 = vcmp.eq.s32.totalorder %v363_v42, %v1700_v49  ;;  %vm402_vm7 = vcmp.eq.s32.totalorder %v366_v41, %v1700_v49 }
  0xc3   : > { %v1100_v44 = vsel %vm401_vm0, 1.0, %v1539_v52  ;;  %v1101_v47 = vsel %vm402_vm7, 1.0, %v1539_v52 }
  0xc4   : > { %1301 = vmatmul.mubr.msk.f32.gmra.mrb[18].mxu1 %vm659_vm3, %v1099_v43 }
  0xc5   : > { %v372_v45 = vpop.permute.xlu1 %371  ;;  %1303 = vmatprep.mubr.msk.f32.mxu1 %vm659_vm3, %v1100_v44  ;;  %v369_v46 = vpop.permute.xlu0 %368 }
  0xc6   : > { %vm403_vm8 = vcmp.eq.s32.totalorder %v369_v46, %v1700_v49  ;;  %vm404_vm9 = vcmp.eq.s32.totalorder %v372_v45, %v1700_v49 }
  0xc7   : > { %v1102_v48 = vsel %vm403_vm8, 1.0, %v1539_v52  ;;  %v1103_v53 = vsel %vm404_vm9, 1.0, %v1539_v52 }
  0xc8   : > { %1304 = vmatmul.mubr.msk.f32.gmra.mrb[20].mxu1 %vm659_vm3, %v1101_v47 }
  0xc9   : > { %v378_v50 = vpop.permute.xlu1 %377  ;;  %1306 = vmatprep.mubr.msk.f32.mxu1 %vm659_vm3, %v1102_v48  ;;  %v375_v51 = vpop.permute.xlu0 %374 }
  0xca   : > { %vm405_vm10 = vcmp.eq.s32.totalorder %v375_v51, %v1700_v49  ;;  %vm406_vm11 = vcmp.eq.s32.totalorder %v378_v50, %v1700_v49 }
  0xcb   : > { %v1104_v54 = vsel %vm405_vm10, 1.0, %v1539_v52  ;;  %v1105_v57 = vsel %vm406_vm11, 1.0, %v1539_v52 }
  0xcc   : > { %1307 = vmatmul.mubr.msk.f32.gmra.mrb[22].mxu1 %vm659_vm3, %v1103_v53 }
  0xcd   : > { %v384_v55 = vpop.permute.xlu1 %383  ;;  %1309 = vmatprep.mubr.msk.f32.mxu1 %vm659_vm3, %v1104_v54  ;;  %v381_v56 = vpop.permute.xlu0 %380 }
  0xce   : > { %vm407_vm12 = vcmp.eq.s32.totalorder %v381_v56, %v1700_v49  ;;  %vm408_vm13 = vcmp.eq.s32.totalorder %v384_v55, %v1700_v49 }
  0xcf   : > { %v1106_v58 = vsel %vm407_vm12, 1.0, %v1539_v52  ;;  %v1107_v61 = vsel %vm408_vm13, 1.0, %v1539_v52 }
  0xd0   : > { %1310 = vmatmul.mubr.msk.f32.gmra.mrb[24].mxu1 %vm659_vm3, %v1105_v57 }
  0xd1   : > { %v390_v59 = vpop.permute.xlu1 %389  ;;  %1312 = vmatprep.mubr.msk.f32.mxu1 %vm659_vm3, %v1106_v58  ;;  %v387_v60 = vpop.permute.xlu0 %386 }
  0xd2   : > { %vm409_vm14 = vcmp.eq.s32.totalorder %v387_v60, %v1700_v49  ;;  %vm410_vm15 = vcmp.eq.s32.totalorder %v390_v59, %v1700_v49 }
  0xd3   : > { %v1108_v62 = vsel %vm409_vm14, 1.0, %v1539_v52  ;;  %v1109_v1 = vsel %vm410_vm15, 1.0, %v1539_v52 }
  0xd4   : > { %1313 = vmatmul.mubr.msk.f32.gmra.mrb[26].mxu1 %vm659_vm3, %v1107_v61 }
  0xd5   : > { %v396_v63 = vpop.permute.xlu1 %395  ;;  %1315 = vmatprep.mubr.msk.f32.mxu1 %vm659_vm3, %v1108_v62  ;;  %v393_v0 = vpop.permute.xlu0 %392  ;;  %v1542_v62 = vmov 1.0  }
  0xd6   : > { %vm411_vm1 = vcmp.eq.s32.totalorder %v393_v0, %v1700_v49  ;;  %vm412_vm2 = vcmp.eq.s32.totalorder %v396_v63, %v1700_v49 }
  0xd7   : > { %v1110_v2 = vsel %vm411_vm1, 1.0, %v1539_v52  ;;  %v1111_v3 = vsel %vm412_vm2, 1.0, %v1539_v52 }
  0xd8   : > { %1316 = vmatmul.mubr.msk.f32.gmra.mrb[28].mxu1 %vm659_vm3, %v1109_v1 }
  0xd9   : > { %1318 = vmatprep.mubr.msk.f32.mxu1 %vm659_vm3, %v1110_v2 }
  0xdc   : > { %1319 = vmatmul.mubr.msk.f32.gmra.mrb[30].mxu1 %vm659_vm3, %v1111_v3  ;;  %vm869_vm3 = vcmask 261120  }
  0xdd   : > { %vm1833_vm5 = vmpackc.low %vm869_vm3, %vm869_vm3 }
 0x173   : > { %v1251_v5 = vpop.f32.mrb[0].mxu1 }
 0x174   : > { %v568_v6 = vpop.f32.mrb[1].mxu1 }
 0x177   : > { %v1254_v7 = vpop.f32.mrb[2].mxu1 }
 0x178   : > { %v578_v8 = vpop.f32.mrb[3].mxu1 }
 0x17b   : > { %v1257_v9 = vpop.f32.mrb[4].mxu1 }
 0x17c   : > { %v588_v49 = vpop.f32.mrb[5].mxu1 }
 0x17f   : > { %v1260_v10 = vpop.f32.mrb[6].mxu1 }
 0x180   : > { %v598_v11 = vpop.f32.mrb[7].mxu1 }
 0x183   : > { %v1263_v12 = vpop.f32.mrb[8].mxu1 }
 0x184   : > { %v608_v13 = vpop.f32.mrb[9].mxu1 }
 0x187   : > { %v1266_v14 = vpop.f32.mrb[10].mxu1 }
 0x188   : > { %v618_v15 = vpop.f32.mrb[11].mxu1 }
 0x18b   : > { %v1269_v16 = vpop.f32.mrb[12].mxu1 }
 0x18c   : > { %v628_v17 = vpop.f32.mrb[13].mxu1 }
 0x18f   : > { %v1272_v18 = vpop.f32.mrb[14].mxu1 }
 0x190   : > { %v638_v19 = vpop.f32.mrb[15].mxu1 }
 0x193   : > { %v1299_v20 = vpop.f32.mrb[16].mxu1 }
 0x194   : > { %v854_v21 = vmul.f32 %v1299_v20, %v1251_v5  ;;  %v774_v52 = vpop.f32.mrb[17].mxu1 }
 0x195   : > { %v853_v22 = vmul.f32 %v774_v52, %v568_v6 }
 0x197   : > { %v1397_v24 = vpack.c.bf16 %v854_v21, %v853_v22  ;;  %v1302_v25 = vpop.f32.mrb[18].mxu1 }
 0x198   : > { %v856_v26 = vmul.f32 %v1302_v25, %v1254_v7  ;;  %v784_v27 = vpop.f32.mrb[19].mxu1 }
 0x199   : > { %v855_v28 = vmul.f32 %v784_v27, %v578_v8  ;;  %1399 = vmatpush3.bf16.xpose.msk.msra.mxu0 %vm1833_vm5, %v1397_v24 }
 0x19a   : > { %1400 = vmatprep.subr.bf16.mxu0 %v1540_v4 }
 0x19b   : > { %v1401_v29 = vpack.c.bf16 %v856_v26, %v855_v28  ;;  %v1305_v30 = vpop.f32.mrb[20].mxu1 }
 0x19c   : > { %v858_v31 = vmul.f32 %v1305_v30, %v1257_v9  ;;  %v794_v32 = vpop.f32.mrb[21].mxu1 }
 0x19d   : > { %v857_v33 = vmul.f32 %v794_v32, %v588_v49 }
 0x19f   : > { %v1405_v34 = vpack.c.bf16 %v858_v31, %v857_v33  ;;  %v1308_v35 = vpop.f32.mrb[22].mxu1 }
 0x1a0   : > { %v860_v36 = vmul.f32 %v1308_v35, %v1260_v10  ;;  %v804_v37 = vpop.f32.mrb[23].mxu1 }
 0x1a1   : > { %v859_v38 = vmul.f32 %v804_v37, %v598_v11  ;;  %1403 = vmatpush3.bf16.xpose.msk.msra.mxu0 %vm1833_vm5, %v1401_v29 }
 0x1a2   : > { %1404 = vmatprep.subr.bf16.mxu0 %v1540_v4 }
 0x1a3   : > { %v1409_v39 = vpack.c.bf16 %v860_v36, %v859_v38  ;;  %v1311_v40 = vpop.f32.mrb[24].mxu1 }
 0x1a4   : > { %v862_v41 = vmul.f32 %v1311_v40, %v1263_v12  ;;  %v814_v42 = vpop.f32.mrb[25].mxu1 }
 0x1a5   : > { %v861_v43 = vmul.f32 %v814_v42, %v608_v13 }
 0x1a7   : > { %v1413_v44 = vpack.c.bf16 %v862_v41, %v861_v43  ;;  %v1314_v45 = vpop.f32.mrb[26].mxu1 }
 0x1a8   : > { %v864_v46 = vmul.f32 %v1314_v45, %v1266_v14  ;;  %v824_v47 = vpop.f32.mrb[27].mxu1 }
 0x1a9   : > { %v863_v48 = vmul.f32 %v824_v47, %v618_v15  ;;  %1407 = vmatpush3.bf16.xpose.msk.msra.mxu0 %vm1833_vm5, %v1405_v34 }
 0x1aa   : > { %1408 = vmatprep.subr.bf16.mxu0 %v1540_v4 }
 0x1ab   : > { %v1417_v50 = vpack.c.bf16 %v864_v46, %v863_v48  ;;  %v1317_v51 = vpop.f32.mrb[28].mxu1 }
 0x1ac   : > { %v866_v53 = vmul.f32 %v1317_v51, %v1269_v16  ;;  %v834_v54 = vpop.f32.mrb[29].mxu1 }
 0x1ad   : > { %v865_v55 = vmul.f32 %v834_v54, %v628_v17 }
 0x1af   : > { %v1421_v56 = vpack.c.bf16 %v866_v53, %v865_v55  ;;  %v1320_v57 = vpop.f32.mrb[30].mxu1 }
 0x1b0   : > { %v868_v58 = vmul.f32 %v1320_v57, %v1272_v18  ;;  %v844_v59 = vpop.f32.mrb[31].mxu1 }
 0x1b1   : > { %v867_v60 = vmul.f32 %v844_v59, %v638_v19  ;;  %1411 = vmatpush3.bf16.xpose.msk.msra.mxu0 %vm1833_vm5, %v1409_v39 }
 0x1b2   : > { %1412 = vmatprep.subr.bf16.mxu0 %v1540_v4 }
 0x1b3   : > { %v1425_v61 = vpack.c.bf16 %v868_v58, %v867_v60 }
 0x1b9   : > { %1415 = vmatpush3.bf16.xpose.msk.msra.mxu0 %vm1833_vm5, %v1413_v44 }
 0x1ba   : > { %1416 = vmatprep.subr.bf16.mxu0 %v1540_v4 }
 0x1c1   : > { %1419 = vmatpush3.bf16.xpose.msk.msra.mxu0 %vm1833_vm5, %v1417_v50 }
 0x1c2   : > { %1420 = vmatprep.subr.bf16.mxu0 %v1540_v4 }
 0x1c9   : > { %1423 = vmatpush3.bf16.xpose.msk.msra.mxu0 %vm1833_vm5, %v1421_v56 }
 0x1ca   : > { %1424 = vmatprep.subr.bf16.mxu0 %v1540_v4 }
 0x1d1   : > { %1427 = vmatpush3.bf16.xpose.msk.msra.mxu0 %vm1833_vm5, %v1425_v61 }
 0x1d8   : > { %1354 = vmatmul.mubr.msk.f32.vlgmr.msra.gmra.mrb[0].mxu0 %vm869_vm3, %v1542_v62 }
 0x2ab   : > { %v987_v63 = vpop.f32.mrb[0].mxu0 }
 0x2ac   : > { %991 = vst [vmem:[%s206_s22] sm:$0x1] %v987_v63  ;;  %v1355_v0 = vpop.f32.mrb[1].mxu0 }
 0x2ad   : > { %1487 = shalt.err (!%p1484_p3)
}
 0x2ae   : > { %s1488_s27 = scalar_lea.hbm %s1868_s30, 16  ;;  %s1492_s13 = scalar_lea.hbm %s1912_s4, 32 }
 0x2af   : > { %p1489_p4 = scmp.ne.s32.totalorder %s1868_s30, %s1488_s27  ;;  %p1493_p9 = scmp.lt.u32.totalorder %s1868_s30, %s1912_s4 }
 0x2b0   : > { %p1494_p10 = scmp.lt.u32.totalorder %s1492_s13, %s1488_s27  ;;  %p1496_p12 = scmp.lt.u32.totalorder %s1488_s27, %s1868_s30 }
 0x2b1   : > { %p1490_p7 = pnand %p1489_p4, %p1604_p5 }
 0x2b2   : > { %p1495_p11 = por %p1494_p10, %p1493_p9 }
 0x2b3   : > { %p1491_p8 = pneg %p1490_p7 }
 0x2b4   : > { %p1497_p13 = por %p1496_p12, %p1495_p11 }
 0x2b6   : > { %p1498_p0 = pnand %p1497_p13, %p1491_p8 }
 0x2b8   : > { %1501 = shalt.err (!%p1498_p0)
}
 0x2b9   : > { %1428 = dma.vmem_to_hbm [thread:$0]  (%p1604_p5), %s1862_s23, 16, %s1868_s30, %s993_s5  }
 0x2ba PF: > { %p1434_p1 = scmp.ge.s32.totalorder %s1536_s18, 2  ;;  %s1017_s19 = sand.u32 1, %s1524_s15  }
 0x2bb   : > { %s1018_s20 = scalar_lea.sflag [#allocation3], %s1017_s19 }
 0x2bc   : > { %p1431_p2 = pnand %p1434_p1, %p1608_p6 }
 0x2be   : > { %1519 = dma.done.wait (!%p1431_p2), %s1018_s20, 16  }
 0x2bf   : > { %1521 = vsyncadd (!%p1431_p2), %s1018_s20, 4294967280  ;;  %p14_p3 = scmp.ge.s32.totalorder %s1592_s21, 4   ;;  %s1917_s15 = smov %s1528_s16 }
 0x2c0   : > { %s1918_s16 = smov %s1532_s17  ;;  %s1919_s17 = smov %s1602_s24 }
 0x2c1   : > { %s1920_s18 = smov %s1592_s21  ;;  %16 = sbr.rel (!%p14_p3) target bundleno = 3 (0x3), region = 74 }
 0x2c8   :  { %1022 = vsyncpa [#allocation3], 1 }
 0x2c9   :  { %1024 = vsyncpa [#allocation3 + $0x1], 1 }

</bundles_post_ra>
